<compile_context>
chip_gen: v7x
topology: tpu7x:2x2x1
jax: 0.10.0
libtpu: 0.0.40
codegen_flags: <defaults>
</compile_context>

<pallas_src>
import jax
import jax.numpy as jnp
import numpy as np
from jax import lax
from jax.experimental import pallas as pl
from jax.experimental.pallas import tpu as pltpu


# ----------------------------------------------------------------------------
# Kernel: operates on a (S, TB) state tile with batch on the lane axis.
# ----------------------------------------------------------------------------
def actor_critic_eval_kernel(
    xT_ref, act_ref,
    W1_ref, b1_ref, W2_ref, b2_ref, W3_ref, b3_ref,
    out_ref,
):
    xT = xT_ref[...]                                        # (S, TB) f32

    # Fused actor|critic MLP (block-diagonal weights, batch on lanes).
    h1 = jnp.maximum(
        jnp.dot(W1_ref[...], xT, preferred_element_type=jnp.float32)
        + b1_ref[...], 0.0)                                 # (2H, TB)
    h2 = jnp.maximum(
        jnp.dot(W2_ref[...], h1, preferred_element_type=jnp.float32)
        + b2_ref[...], 0.0)                                 # (2H, TB)
    y = (jnp.dot(W3_ref[...], h2, preferred_element_type=jnp.float32)
         + b3_ref[...])                                     # (A+1, TB)

    A = y.shape[0] - 1
    logitsT = y[:A, :]                                      # (A, TB) actor logits^T
    valueT = y[A:, :]                                       # (1, TB) critic value^T

    # log_softmax over the action (sublane) axis.
    # NOTE: the reference subtracts a *global* max first; log_softmax is
    # shift-invariant so that cancels exactly and is omitted here.
    m = jnp.max(logitsT, axis=0, keepdims=True)
    lse = m + jnp.log(jnp.sum(jnp.exp(logitsT - m), axis=0, keepdims=True))
    logp_raw = logitsT - lse                                # (A, TB), all <= 0

    # Categorical(probs=log_softmax(...)) quirk from the reference:
    # PyTorch renormalizes "probs" along the last dim, then clamps + logs.
    s = jnp.sum(logp_raw, axis=0, keepdims=True)            # (1, TB), < 0
    probs = logp_raw * pl.reciprocal(s, approx=True)        # EUP divide
    eps = jnp.float32(1.1920929e-07)                        # torch.finfo(f32).eps
    cat_logits = jnp.log(jnp.clip(probs, eps, 1.0 - eps))   # Categorical.logits

    # log_prob(action): masked select-and-sum (no float one-hot multiply).
    act = act_ref[...]                                      # (1, TB) int32
    row = lax.broadcasted_iota(jnp.int32, logitsT.shape, 0)
    logp = jnp.sum(jnp.where(row == act, cat_logits, 0.0),
                   axis=0, keepdims=True)                   # (1, TB)

    # entropy = -(clamp(logits, min=finfo.min) * probs).sum(action axis)
    min_real = jnp.float32(jnp.finfo(jnp.float32).min)
    ent = -jnp.sum(jnp.maximum(cat_logits, min_real) * probs,
                   axis=0, keepdims=True)                   # (1, TB)

    # Single lane-dense writeback: rows = [logprob, value, entropy].
    out_ref[...] = jnp.concatenate([logp, valueT, ent], axis=0)  # (3, TB)


# ----------------------------------------------------------------------------
# Host-side weight packing (done once, outside the kernel).
# Params are stored as W: [in, out] (= PyTorch W.T) and b: [1, out].
# ----------------------------------------------------------------------------
def pack_params(params, hidden=64):
    (aW1, ab1, aW2, ab2, aW3, ab3, cW1, cb1, cW2, cb2, cW3, cb3) = params
    A = aW3.shape[1]
    f32 = jnp.float32

    # Layer 1: [2H, S] (actor rows on top, critic rows below).
    W1f = jnp.concatenate([aW1.T, cW1.T], axis=0).astype(f32)
    b1f = jnp.concatenate([ab1, cb1], axis=1).T.astype(f32)          # (2H, 1)

    # Layer 2: block-diagonal [2H, 2H].
    z = jnp.zeros((hidden, hidden), f32)
    W2f = jnp.block([[aW2.T, z], [z, cW2.T]]).astype(f32)
    b2f = jnp.concatenate([ab2, cb2], axis=1).T.astype(f32)          # (2H, 1)

    # Layer 3: block-diagonal [A+1, 2H]  (rows 0:A actor logits, row A value).
    W3f = jnp.block([[aW3.T, jnp.zeros((A, hidden), f32)],
                     [jnp.zeros((1, hidden), f32), cW3.T]]).astype(f32)
    b3f = jnp.concatenate([ab3, cb3], axis=1).T.astype(f32)          # (A+1, 1)

    return W1f, b1f, W2f, b2f, W3f, b3f


def _pick_batch_tile(B):
    # When tiling the lane axis, the tile must be a multiple of 128.
    if B % 128 != 0:
        return B
    for tb in (2048, 1024, 512, 256, 128):
        if B % tb == 0 and B > tb:
            return tb
    return B


# ----------------------------------------------------------------------------
# Wrapper: Pallas equivalent of ActorCritic.evaluate(state, action).
# Returns (action_logprobs [B], state_values [B,1], dist_entropy [B]).
# ----------------------------------------------------------------------------
def actor_critic_evaluate(state, action, params, hidden=64):
    B, S = state.shape
    A = params[4].shape[1]                      # aW3 is [hidden, A]
    W1f, b1f, W2f, b2f, W3f, b3f = pack_params(params, hidden)

    xT = state.astype(jnp.float32).T            # (S, B)  batch on lanes
    actT = action.reshape(1, B).astype(jnp.int32)

    TB = _pick_batch_tile(B)
    grid = (B // TB,)

    def tiled(rows):
        return pl.BlockSpec((rows, TB), lambda i: (0, i))

    def resident(arr):
        return pl.BlockSpec(arr.shape, lambda i: (0, 0))

    out = pl.pallas_call(
        actor_critic_eval_kernel,
        out_shape=jax.ShapeDtypeStruct((3, B), jnp.float32),
        grid=grid,
        in_specs=[
            tiled(S),                 # state^T tile
            tiled(1),                 # action tile
            resident(W1f), resident(b1f),
            resident(W2f), resident(b2f),
            resident(W3f), resident(b3f),
        ],
        out_specs=pl.BlockSpec((3, TB), lambda i: (0, i)),
        compiler_params=pltpu.CompilerParams(
            dimension_semantics=("parallel",)),
    )(xT, actT, W1f, b1f, W2f, b2f, W3f, b3f)

    logp = out[0, :]
    value = out[1, :].reshape(B, 1)
    ent = out[2, :]
    return logp, value, ent


# ----------------------------------------------------------------------------
# Parameter init (PyTorch nn.Linear default: U(-1/sqrt(fan_in), 1/sqrt(fan_in)))
# ----------------------------------------------------------------------------
def init_linear(key, fan_in, fan_out):
    kw, kb = jax.random.split(key)
    bound = 1.0 / jnp.sqrt(jnp.float32(fan_in))
    W = jax.random.uniform(kw, (fan_in, fan_out), jnp.float32, -bound, bound)
    b = jax.random.uniform(kb, (1, fan_out), jnp.float32, -bound, bound)
    return W, b


def init_params(key, state_dim, action_dim, hidden=64):
    ks = jax.random.split(key, 6)
    aW1, ab1 = init_linear(ks[0], state_dim, hidden)
    aW2, ab2 = init_linear(ks[1], hidden, hidden)
    aW3, ab3 = init_linear(ks[2], hidden, action_dim)
    cW1, cb1 = init_linear(ks[3], state_dim, hidden)
    cW2, cb2 = init_linear(ks[4], hidden, hidden)
    cW3, cb3 = init_linear(ks[5], hidden, 1)
    return (aW1, ab1, aW2, ab2, aW3, ab3, cW1, cb1, cW2, cb2, cW3, cb3)


# Pure-JAX reference mirroring the PyTorch evaluate() path (for validation).
def reference_evaluate(state, action, params):
    (aW1, ab1, aW2, ab2, aW3, ab3, cW1, cb1, cW2, cb2, cW3, cb3) = params
    x = state.astype(jnp.float32)
    h1 = jax.nn.relu(x @ aW1 + ab1)
    h2 = jax.nn.relu(h1 @ aW2 + ab2)
    logits = h2 @ aW3 + ab3
    over = jnp.max(logits)                                  # global max (ref quirk)
    logp_raw = jax.nn.log_softmax(logits - over, axis=-1)
    s = jnp.sum(logp_raw, axis=-1, keepdims=True)
    probs = logp_raw / s
    eps = jnp.float32(1.1920929e-07)
    cat_logits = jnp.log(jnp.clip(probs, eps, 1.0 - eps))
    logp = jnp.take_along_axis(cat_logits, action.reshape(-1, 1), axis=-1)[:, 0]
    min_real = jnp.float32(jnp.finfo(jnp.float32).min)
    ent = -jnp.sum(jnp.maximum(cat_logits, min_real) * probs, axis=-1)
    c1 = jax.nn.relu(x @ cW1 + cb1)
    c2 = jax.nn.relu(c1 @ cW2 + cb2)
    value = c2 @ cW3 + cb3
    return logp, value, ent


if __name__ == "__main__":
    B, STATE_DIM, ACTION_DIM = 8, 16, 6

    key = jax.random.PRNGKey(0)
    kp, ks, ka = jax.random.split(key, 3)

    params = init_params(kp, STATE_DIM, ACTION_DIM)
    state = jax.random.normal(ks, (B, STATE_DIM), jnp.float32)
    action = jax.random.randint(ka, (B,), 0, ACTION_DIM, dtype=jnp.int32)

    logp, value, ent = actor_critic_evaluate(state, action, params)
    jax.block_until_ready((logp, value, ent))

    assert logp.shape == (B,)
    assert value.shape == (B, 1)
    assert ent.shape == (B,)

    # Validate against a pure-JAX reference of the PyTorch evaluate() path
    # (loose tolerance: approx reciprocal + fused-matmul ordering differences).
    r_logp, r_value, r_ent = reference_evaluate(state, action, params)
    np.testing.assert_allclose(np.asarray(logp), np.asarray(r_logp),
                               rtol=1e-2, atol=1e-2)
    np.testing.assert_allclose(np.asarray(value), np.asarray(r_value),
                               rtol=1e-2, atol=1e-2)
    np.testing.assert_allclose(np.asarray(ent), np.asarray(r_ent),
                               rtol=1e-2, atol=1e-2)

    # TODO(synk): act() uses Categorical.sample() (stochastic); only the
    # deterministic evaluate() path is implemented in the kernel.
    print("KERNEL_OK")
</pallas_src>

<mosaic_0001>
module attributes {stable_mosaic.version = 11 : i64} {
  func.func @actor_critic_eval_kernel(%arg0: i32, %arg1: memref<16x8xf32, #tpu.memory_space<vmem>>, %arg2: memref<1x8xi32, #tpu.memory_space<vmem>>, %arg3: memref<128x16xf32, #tpu.memory_space<vmem>>, %arg4: memref<128x1xf32, #tpu.memory_space<vmem>>, %arg5: memref<128x128xf32, #tpu.memory_space<vmem>>, %arg6: memref<128x1xf32, #tpu.memory_space<vmem>>, %arg7: memref<7x128xf32, #tpu.memory_space<vmem>>, %arg8: memref<7x1xf32, #tpu.memory_space<vmem>>, %arg9: memref<3x8xf32, #tpu.memory_space<vmem>>) attributes {dimension_semantics = [#tpu.dimension_semantics<parallel>], iteration_bounds = array<i64: 1>, scalar_prefetch = 0 : i64, scratch_operands = 0 : i64, tpu.core_type = #tpu.core_type<tc>, window_params = [{transform_indices = @transform_0, window_bounds = array<i64: 16, 8>}, {transform_indices = @transform_1, window_bounds = array<i64: 1, 8>}, {pipeline_mode = #tpu.pipeline_mode<synchronous>, transform_indices = @transform_2, window_bounds = array<i64: 128, 16>}, {pipeline_mode = #tpu.pipeline_mode<synchronous>, transform_indices = @transform_3, window_bounds = array<i64: 128, 1>}, {pipeline_mode = #tpu.pipeline_mode<synchronous>, transform_indices = @transform_4, window_bounds = array<i64: 128, 128>}, {pipeline_mode = #tpu.pipeline_mode<synchronous>, transform_indices = @transform_5, window_bounds = array<i64: 128, 1>}, {pipeline_mode = #tpu.pipeline_mode<synchronous>, transform_indices = @transform_6, window_bounds = array<i64: 7, 128>}, {pipeline_mode = #tpu.pipeline_mode<synchronous>, transform_indices = @transform_7, window_bounds = array<i64: 7, 1>}, {transform_indices = @transform_8, window_bounds = array<i64: 3, 8>}]} {
    %c0 = arith.constant 0 : index
    %c0_0 = arith.constant 0 : index
    %0 = vector.load %arg1[%c0, %c0_0] : memref<16x8xf32, #tpu.memory_space<vmem>>, vector<16x8xf32>
    %c0_1 = arith.constant 0 : index
    %c0_2 = arith.constant 0 : index
    %1 = vector.load %arg3[%c0_1, %c0_2] : memref<128x16xf32, #tpu.memory_space<vmem>>, vector<128x16xf32>
    %cst = arith.constant dense<0.000000e+00> : vector<128x8xf32>
    %2 = tpu.matmul %1, %0, %cst {dimension_numbers = #tpu.dot_dimension_numbers<[1], [0], [0], [1], [0, 0, 1, 1], [], []>} : vector<128x16xf32>, vector<16x8xf32>, vector<128x8xf32> -> vector<128x8xf32>
    %c0_3 = arith.constant 0 : index
    %c0_4 = arith.constant 0 : index
    %3 = vector.load %arg4[%c0_3, %c0_4] : memref<128x1xf32, #tpu.memory_space<vmem>>, vector<128x1xf32>
    %4 = vector.broadcast %3 : vector<128x1xf32> to vector<128x8xf32>
    %5 = arith.addf %2, %4 : vector<128x8xf32>
    %cst_5 = arith.constant 0.000000e+00 : f32
    %6 = vector.broadcast %cst_5 : f32 to vector<128x8xf32>
    %7 = arith.maximumf %5, %6 : vector<128x8xf32>
    %c0_6 = arith.constant 0 : index
    %c0_7 = arith.constant 0 : index
    %8 = vector.load %arg5[%c0_6, %c0_7] : memref<128x128xf32, #tpu.memory_space<vmem>>, vector<128x128xf32>
    %cst_8 = arith.constant dense<0.000000e+00> : vector<128x8xf32>
    %9 = tpu.matmul %8, %7, %cst_8 {dimension_numbers = #tpu.dot_dimension_numbers<[1], [0], [0], [1], [0, 0, 1, 1], [], []>} : vector<128x128xf32>, vector<128x8xf32>, vector<128x8xf32> -> vector<128x8xf32>
    %c0_9 = arith.constant 0 : index
    %c0_10 = arith.constant 0 : index
    %10 = vector.load %arg6[%c0_9, %c0_10] : memref<128x1xf32, #tpu.memory_space<vmem>>, vector<128x1xf32>
    %11 = vector.broadcast %10 : vector<128x1xf32> to vector<128x8xf32>
    %12 = arith.addf %9, %11 : vector<128x8xf32>
    %cst_11 = arith.constant 0.000000e+00 : f32
    %13 = vector.broadcast %cst_11 : f32 to vector<128x8xf32>
    %14 = arith.maximumf %12, %13 : vector<128x8xf32>
    %c0_12 = arith.constant 0 : index
    %c0_13 = arith.constant 0 : index
    %15 = vector.load %arg7[%c0_12, %c0_13] : memref<7x128xf32, #tpu.memory_space<vmem>>, vector<7x128xf32>
    %cst_14 = arith.constant dense<0.000000e+00> : vector<7x8xf32>
    %16 = tpu.matmul %15, %14, %cst_14 {dimension_numbers = #tpu.dot_dimension_numbers<[1], [0], [0], [1], [0, 0, 1, 1], [], []>} : vector<7x128xf32>, vector<128x8xf32>, vector<7x8xf32> -> vector<7x8xf32>
    %c0_15 = arith.constant 0 : index
    %c0_16 = arith.constant 0 : index
    %17 = vector.load %arg8[%c0_15, %c0_16] : memref<7x1xf32, #tpu.memory_space<vmem>>, vector<7x1xf32>
    %18 = vector.broadcast %17 : vector<7x1xf32> to vector<7x8xf32>
    %19 = arith.addf %16, %18 : vector<7x8xf32>
    %20 = vector.extract_strided_slice %19 {offsets = [0, 0], sizes = [6, 8], strides = [1, 1]} : vector<7x8xf32> to vector<6x8xf32>
    %21 = vector.extract_strided_slice %19 {offsets = [6, 0], sizes = [1, 8], strides = [1, 1]} : vector<7x8xf32> to vector<1x8xf32>
    %cst_17 = arith.constant dense<0xFF800000> : vector<8xf32>
    %22 = vector.multi_reduction <maximumf>, %20, %cst_17 [0] : vector<6x8xf32> to vector<8xf32>
    %23 = vector.shape_cast %22 : vector<8xf32> to vector<1x8xf32>
    %24 = vector.broadcast %23 : vector<1x8xf32> to vector<6x8xf32>
    %25 = arith.subf %20, %24 : vector<6x8xf32>
    %26 = math.exp %25 : vector<6x8xf32>
    %cst_18 = arith.constant dense<0.000000e+00> : vector<8xf32>
    %27 = vector.multi_reduction <add>, %26, %cst_18 [0] : vector<6x8xf32> to vector<8xf32>
    %28 = vector.shape_cast %27 : vector<8xf32> to vector<1x8xf32>
    %29 = math.log %28 : vector<1x8xf32>
    %30 = arith.addf %23, %29 : vector<1x8xf32>
    %31 = vector.broadcast %30 : vector<1x8xf32> to vector<6x8xf32>
    %32 = arith.subf %20, %31 : vector<6x8xf32>
    %cst_19 = arith.constant dense<0.000000e+00> : vector<8xf32>
    %33 = vector.multi_reduction <add>, %32, %cst_19 [0] : vector<6x8xf32> to vector<8xf32>
    %34 = vector.shape_cast %33 : vector<8xf32> to vector<1x8xf32>
    %35 = tpu.reciprocal %34 {approx = true} : vector<1x8xf32> -> vector<1x8xf32>
    %36 = vector.broadcast %35 : vector<1x8xf32> to vector<6x8xf32>
    %37 = arith.mulf %32, %36 : vector<6x8xf32>
    %cst_20 = arith.constant 1.000000e+00 : f32
    %cst_21 = arith.constant 1.1920929E-7 : f32
    %38 = arith.subf %cst_20, %cst_21 : f32
    %cst_22 = arith.constant 1.1920929E-7 : f32
    %39 = vector.broadcast %cst_22 : f32 to vector<6x8xf32>
    %40 = arith.maximumf %39, %37 : vector<6x8xf32>
    %41 = vector.broadcast %38 : f32 to vector<6x8xf32>
    %42 = arith.minimumf %41, %40 : vector<6x8xf32>
    %43 = math.log %42 : vector<6x8xf32>
    %c0_23 = arith.constant 0 : index
    %c0_24 = arith.constant 0 : index
    %44 = vector.load %arg2[%c0_23, %c0_24] : memref<1x8xi32, #tpu.memory_space<vmem>>, vector<1x8xi32>
    %45 = tpu.iota {dimensions = array<i32: 0>} : vector<6x8xi32>
    %46 = vector.broadcast %44 : vector<1x8xi32> to vector<6x8xi32>
    %47 = arith.cmpi eq, %45, %46 : vector<6x8xi32>
    %cst_25 = arith.constant 0.000000e+00 : f32
    %48 = vector.broadcast %cst_25 : f32 to vector<6x8xf32>
    %49 = arith.select %47, %43, %48 : vector<6x8xi1>, vector<6x8xf32>
    %cst_26 = arith.constant dense<0.000000e+00> : vector<8xf32>
    %50 = vector.multi_reduction <add>, %49, %cst_26 [0] : vector<6x8xf32> to vector<8xf32>
    %51 = vector.shape_cast %50 : vector<8xf32> to vector<1x8xf32>
    %cst_27 = arith.constant -3.40282347E+38 : f32
    %52 = vector.broadcast %cst_27 : f32 to vector<6x8xf32>
    %53 = arith.maximumf %43, %52 : vector<6x8xf32>
    %54 = arith.mulf %53, %37 : vector<6x8xf32>
    %cst_28 = arith.constant dense<0.000000e+00> : vector<8xf32>
    %55 = vector.multi_reduction <add>, %54, %cst_28 [0] : vector<6x8xf32> to vector<8xf32>
    %56 = vector.shape_cast %55 : vector<8xf32> to vector<1x8xf32>
    %cst_29 = arith.constant 0.000000e+00 : f32
    %57 = vector.broadcast %cst_29 : f32 to vector<1x8xf32>
    %58 = arith.subf %57, %56 : vector<1x8xf32>
    %59 = tpu.concatenate %51, %21, %58 in 0 : vector<1x8xf32>, vector<1x8xf32>, vector<1x8xf32> -> vector<3x8xf32>
    %c0_30 = arith.constant 0 : index
    %c0_31 = arith.constant 0 : index
    %60 = vector.load %arg9[%c0_30, %c0_31] : memref<3x8xf32, #tpu.memory_space<vmem>>, vector<3x8xf32>
    tpu.vector_store %arg9[%c0_30, %c0_31], %59 {strides = array<i32>} : memref<3x8xf32, #tpu.memory_space<vmem>>, vector<3x8xf32>,
    return
  }
  func.func @transform_0(%arg0: i32) -> (i32, i32) {
    %c0_i32 = arith.constant 0 : i32
    %c0_i32_0 = arith.constant 0 : i32
    return %c0_i32, %arg0 : i32, i32
  }
  func.func @transform_1(%arg0: i32) -> (i32, i32) {
    %c0_i32 = arith.constant 0 : i32
    %c0_i32_0 = arith.constant 0 : i32
    return %c0_i32, %arg0 : i32, i32
  }
  func.func @transform_2(%arg0: i32) -> (i32, i32) {
    %c0_i32 = arith.constant 0 : i32
    %c0_i32_0 = arith.constant 0 : i32
    %c0_i32_1 = arith.constant 0 : i32
    return %c0_i32, %c0_i32_0 : i32, i32
  }
  func.func @transform_3(%arg0: i32) -> (i32, i32) {
    %c0_i32 = arith.constant 0 : i32
    %c0_i32_0 = arith.constant 0 : i32
    %c0_i32_1 = arith.constant 0 : i32
    return %c0_i32, %c0_i32_0 : i32, i32
  }
  func.func @transform_4(%arg0: i32) -> (i32, i32) {
    %c0_i32 = arith.constant 0 : i32
    %c0_i32_0 = arith.constant 0 : i32
    %c0_i32_1 = arith.constant 0 : i32
    return %c0_i32, %c0_i32_0 : i32, i32
  }
  func.func @transform_5(%arg0: i32) -> (i32, i32) {
    %c0_i32 = arith.constant 0 : i32
    %c0_i32_0 = arith.constant 0 : i32
    %c0_i32_1 = arith.constant 0 : i32
    return %c0_i32, %c0_i32_0 : i32, i32
  }
  func.func @transform_6(%arg0: i32) -> (i32, i32) {
    %c0_i32 = arith.constant 0 : i32
    %c0_i32_0 = arith.constant 0 : i32
    %c0_i32_1 = arith.constant 0 : i32
    return %c0_i32, %c0_i32_0 : i32, i32
  }
  func.func @transform_7(%arg0: i32) -> (i32, i32) {
    %c0_i32 = arith.constant 0 : i32
    %c0_i32_0 = arith.constant 0 : i32
    %c0_i32_1 = arith.constant 0 : i32
    return %c0_i32, %c0_i32_0 : i32, i32
  }
  func.func @transform_8(%arg0: i32) -> (i32, i32) {
    %c0_i32 = arith.constant 0 : i32
    %c0_i32_0 = arith.constant 0 : i32
    return %c0_i32, %arg0 : i32, i32
  }
}

</mosaic_0001>

<bundles_post_ra>
// kernel: tpu_custom_call.1
= control target key start
LH: loop header
LB: loop body
LE: loop exit
PB: predicated region body
PF: predicated region fallthrough
CT: control target
= control target key end

     0   :  { %vm144_vm0 = vcmask 130048   ;;  %v1090_v4 = vmov 0   ;;  %s1394_s0 = inlined_call_operand.vmem [shape: f32[16,8], index: 0, kind: input, shape index: {}]   ;;  %s1395_s1 = inlined_call_operand.vmem [shape: s32[1,8], index: 1, kind: input, shape index: {}]   ;;  %s1396_s2 = inlined_call_operand.vmem [shape: f32[128,16], index: 2, kind: input, shape index: {}]   ;;  %s1397_s3 = inlined_call_operand.vmem [shape: f32[128,1], index: 3, kind: input, shape index: {}]   ;;  %s1398_s4 = inlined_call_operand.vmem [shape: f32[128,128], index: 4, kind: input, shape index: {}]   ;;  %s1399_s5 = inlined_call_operand.vmem [shape: f32[128,1], index: 5, kind: input, shape index: {}]   ;;  %s1400_s6 = inlined_call_operand.vmem [shape: f32[7,128], index: 6, kind: input, shape index: {}]   ;;  %s1401_s7 = inlined_call_operand.vmem [shape: f32[7,1], index: 7, kind: input, shape index: {}]   ;;  %s1402_s8 = inlined_call_operand.hbm [shape: f32[3,8], index: 8, kind: output, shape index: {}]  }
   0x1   :  { %v30_v0 = vld [vmem:[%s1394_s0] sm:$0xff]  ;;  %v31_v1 = vld [vmem:[%s1394_s0 + $0x8] sm:$0xff]  ;;  %1056 = vset.pattern.permute.xlu0 %v1090_v4  ;;  %1057 = vset.pattern.permute.xlu1 %v1090_v4  ;;  %v34_v7 = vld [vmem:[%s1396_s2 + $0x10] sm:$0xff] }
   0x2   :  { %v32_v2 = vld [vmem:[%s1396_s2] sm:$0xff]  ;;  %v991_v3 = vpack.c.bf16 %v31_v1, %v30_v0  ;;  %v33_v5 = vld [vmem:[%s1396_s2 + $0x8] sm:$0xff]  ;;  %v50_v9 = vld [vmem:[%s1397_s3 + $0x10] sm:$0xff] }
   0x3   :  { %876 = vmatprep.mubr.msk.f32.mxu0 %vm144_vm0, %v32_v2  ;;  %v48_v6 = vld [vmem:[%s1397_s3] sm:$0xff]  ;;  %v49_v8 = vld [vmem:[%s1397_s3 + $0x8] sm:$0xff]  ;;  %76 = vperm.xlu1 %1057, %v50_v9   ;;  %v35_v10 = vld [vmem:[%s1396_s2 + $0x18] sm:$0xff] }
   0x4   :  { %992 = vmatprep.subr.bf16.mxu0 %v991_v3  ;;  %66 = vperm.xlu0 %1056, %v48_v6   ;;  %v51_v11 = vld [vmem:[%s1397_s3 + $0x18] sm:$0xff]  ;;  %v36_v12 = vld [vmem:[%s1396_s2 + $0x20] sm:$0xff]  ;;  %v37_v14 = vld [vmem:[%s1396_s2 + $0x28] sm:$0xff] }
   0x5   :  { %994 = vmatpush3.bf16.msra.mxu0 %v991_v3  ;;  %v52_v13 = vld [vmem:[%s1397_s3 + $0x20] sm:$0xff]  ;;  %v53_v15 = vld [vmem:[%s1397_s3 + $0x28] sm:$0xff]  ;;  %v38_v16 = vld [vmem:[%s1396_s2 + $0x30] sm:$0xff] }
   0x6   :  { %v54_v17 = vld [vmem:[%s1397_s3 + $0x30] sm:$0xff]  ;;  %v39_v18 = vld [vmem:[%s1396_s2 + $0x38] sm:$0xff]  ;;  %v40_v20 = vld [vmem:[%s1396_s2 + $0x40] sm:$0xff] }
   0x7   :  { %81 = vperm.xlu1 %1057, %v51_v11   ;;  %v55_v19 = vld [vmem:[%s1397_s3 + $0x38] sm:$0xff] }
   0x8   :  { %877 = vmatmul.mubr.msk.f32.vlgmr.msra.gmra.mrb[0].mxu0 %vm144_vm0, %v33_v5  ;;  %71 = vperm.xlu0 %1056, %v49_v8  }
   0x9   :  { %879 = vmatprep.mubr.msk.f32.mxu0 %vm144_vm0, %v34_v7 }
   0xb   :  { %91 = vperm.xlu1 %1057, %v53_v15  }
   0xc   :  { %880 = vmatmul.mubr.msk.f32.gmra.mrb[2].mxu0 %vm144_vm0, %v35_v10  ;;  %86 = vperm.xlu0 %1056, %v52_v13  }
   0xd   :  { %882 = vmatprep.mubr.msk.f32.mxu0 %vm144_vm0, %v36_v12 }
  0x10   :  { %883 = vmatmul.mubr.msk.f32.gmra.mrb[4].mxu0 %vm144_vm0, %v37_v14  ;;  %96 = vperm.xlu0 %1056, %v54_v17  }
  0x11   :  { %885 = vmatprep.mubr.msk.f32.mxu0 %vm144_vm0, %v38_v16 }
  0x12   :  { %13 = vsyncpa [#allocation3], 0  ;;  %v56_v21 = vld [vmem:[%s1397_s3 + $0x40] sm:$0xff]  ;;  %101 = vperm.xlu1 %1057, %v55_v19   ;;  %v41_v22 = vld [vmem:[%s1396_s2 + $0x48] sm:$0xff]  ;;  %vm1092_vm1 = vmmov 0   ;;  %vm704_vm2 = vcmask 62464  }
  0x13   :  { %v57_v23 = vld [vmem:[%s1397_s3 + $0x48] sm:$0xff]  ;;  %v42_v24 = vld [vmem:[%s1396_s2 + $0x50] sm:$0xff]  ;;  %v43_v26 = vld [vmem:[%s1396_s2 + $0x58] sm:$0xff]  ;;  %vm768_vm4 = vcmask 1040384   ;;  %vm770_vm5 = vcmask 1041408   ;;  %vm772_vm6 = vcmask 59392  }
  0x14   :  { %886 = vmatmul.mubr.msk.f32.gmra.mrb[6].mxu0 %vm144_vm0, %v39_v18  ;;  %106 = vperm.xlu0 %1056, %v56_v21   ;;  %v58_v25 = vld [vmem:[%s1397_s3 + $0x50] sm:$0xff]  ;;  %v59_v27 = vld [vmem:[%s1397_s3 + $0x58] sm:$0xff]  ;;  %v44_v28 = vld [vmem:[%s1396_s2 + $0x60] sm:$0xff] }
  0x15   :  { %888 = vmatprep.mubr.msk.f32.mxu0 %vm144_vm0, %v40_v20  ;;  %v60_v29 = vld [vmem:[%s1397_s3 + $0x60] sm:$0xff]  ;;  %v45_v30 = vld [vmem:[%s1396_s2 + $0x68] sm:$0xff]  ;;  %v46_v32 = vld [vmem:[%s1396_s2 + $0x70] sm:$0xff] }
  0x16   :  { %111 = vperm.xlu1 %1057, %v57_v23   ;;  %v61_v31 = vld [vmem:[%s1397_s3 + $0x68] sm:$0xff]  ;;  %v62_v33 = vld [vmem:[%s1397_s3 + $0x70] sm:$0xff]  ;;  %v47_v34 = vld [vmem:[%s1396_s2 + $0x78] sm:$0xff] }
  0x17   :  { %v63_v35 = vld [vmem:[%s1397_s3 + $0x78] sm:$0xff]  ;;  %v370_v36 = vld [vmem:[%s1399_s5] sm:$0xff]  ;;  %v371_v37 = vld [vmem:[%s1399_s5 + $0x8] sm:$0xff] }
  0x18   :  { %889 = vmatmul.mubr.msk.f32.gmra.mrb[8].mxu0 %vm144_vm0, %v41_v22  ;;  %116 = vperm.xlu0 %1056, %v58_v25   ;;  %v372_v38 = vld [vmem:[%s1399_s5 + $0x10] sm:$0xff]  ;;  %v373_v39 = vld [vmem:[%s1399_s5 + $0x18] sm:$0xff]  ;;  %v374_v40 = vld [vmem:[%s1399_s5 + $0x20] sm:$0xff] }
  0x19   :  { %891 = vmatprep.mubr.msk.f32.mxu0 %vm144_vm0, %v42_v24  ;;  %v375_v41 = vld [vmem:[%s1399_s5 + $0x28] sm:$0xff]  ;;  %v376_v42 = vld [vmem:[%s1399_s5 + $0x30] sm:$0xff]  ;;  %v377_v43 = vld [vmem:[%s1399_s5 + $0x38] sm:$0xff] }
  0x1a   :  { %121 = vperm.xlu1 %1057, %v59_v27   ;;  %v378_v44 = vld [vmem:[%s1399_s5 + $0x40] sm:$0xff]  ;;  %v379_v45 = vld [vmem:[%s1399_s5 + $0x48] sm:$0xff]  ;;  %v380_v46 = vld [vmem:[%s1399_s5 + $0x50] sm:$0xff] }
  0x1b   :  { %v381_v47 = vld [vmem:[%s1399_s5 + $0x58] sm:$0xff]  ;;  %v382_v48 = vld [vmem:[%s1399_s5 + $0x60] sm:$0xff]  ;;  %v383_v49 = vld [vmem:[%s1399_s5 + $0x68] sm:$0xff] }
  0x1c   :  { %892 = vmatmul.mubr.msk.f32.gmra.mrb[10].mxu0 %vm144_vm0, %v43_v26  ;;  %126 = vperm.xlu0 %1056, %v60_v29   ;;  %v384_v50 = vld [vmem:[%s1399_s5 + $0x70] sm:$0xff]  ;;  %v385_v51 = vld [vmem:[%s1399_s5 + $0x78] sm:$0xff]  ;;  %v628_v52 = vld [vmem:[%s1401_s7] sm:$0x7f] }
  0x1d   :  { %894 = vmatprep.mubr.msk.f32.mxu0 %vm144_vm0, %v44_v28  ;;  %v354_v53 = vld [vmem:[%s1398_s4] sm:$0xff] }
  0x1e   :  { %131 = vperm.xlu1 %1057, %v61_v31   ;;  %932 = vmatprep.mubr.f32.mxu1 %v354_v53 }
  0x20   :  { %895 = vmatmul.mubr.msk.f32.gmra.mrb[12].mxu0 %vm144_vm0, %v45_v30  ;;  %136 = vperm.xlu0 %1056, %v62_v33  }
  0x21   :  { %897 = vmatprep.mubr.msk.f32.mxu0 %vm144_vm0, %v46_v32 }
  0x22   :  { %141 = vperm.xlu1 %1057, %v63_v35  }
  0x24   :  { %898 = vmatmul.mubr.msk.f32.gmra.mrb[14].mxu0 %vm144_vm0, %v47_v34  ;;  %388 = vperm.xlu0 %1056, %v370_v36  }
  0x26   :  { %393 = vperm.xlu1 %1057, %v371_v37  }
  0x28   :  { %398 = vperm.xlu0 %1056, %v372_v38  }
  0x2a   :  { %403 = vperm.xlu1 %1057, %v373_v39  }
  0x2c   :  { %408 = vperm.xlu0 %1056, %v374_v40  }
  0x2e   :  { %413 = vperm.xlu1 %1057, %v375_v41  }
  0x30   :  { %418 = vperm.xlu0 %1056, %v376_v42  }
  0x32   :  { %423 = vperm.xlu1 %1057, %v377_v43  }
  0x34   :  { %428 = vperm.xlu0 %1056, %v378_v44  }
  0x36   :  { %433 = vperm.xlu1 %1057, %v379_v45  }
  0x38   :  { %438 = vperm.xlu0 %1056, %v380_v46  }
  0x3a   :  { %443 = vperm.xlu1 %1057, %v381_v47  }
  0x3c   :  { %448 = vperm.xlu0 %1056, %v382_v48  }
  0x3e   :  { %453 = vperm.xlu1 %1057, %v383_v49  }
  0x40   :  { %458 = vperm.xlu0 %1056, %v384_v50  }
  0x42   :  { %463 = vperm.xlu1 %1057, %v385_v51  }
  0x44   :  { %631 = vperm.xlu0 %1056, %v628_v52  }
  0x82   :  { %v77_v54 = vpop.permute.xlu1 %76 }
  0x83   :  { %v67_v55 = vpop.permute.xlu0 %66 }
  0x86   :  { %v82_v56 = vpop.permute.xlu1 %81 }
  0x87   :  { %v72_v57 = vpop.permute.xlu0 %71 }
  0x8a   :  { %v92_v58 = vpop.permute.xlu1 %91 }
  0x8b   :  { %v87_v59 = vpop.permute.xlu0 %86 }
  0x8f   :  { %v97_v4 = vpop.permute.xlu0 %96 }
  0x91   :  { %v102_v1 = vpop.permute.xlu1 %101 }
  0x93   :  { %v107_v17 = vpop.permute.xlu0 %106 }
  0x95   :  { %v112_v14 = vpop.permute.xlu1 %111 }
  0x97   :  { %v117_v29 = vpop.permute.xlu0 %116 }
  0x99   :  { %v122_v26 = vpop.permute.xlu1 %121 }
  0x9b   :  { %v127_v42 = vpop.permute.xlu0 %126 }
  0x9d   :  { %v132_v39 = vpop.permute.xlu1 %131 }
  0xa1   :  { %v142_v51 = vpop.permute.xlu1 %141 }
  0xdb   :  { %v878_v60 = vpop.f32.mrb[0].mxu0 }
  0xdc   :  { %v265_v61 = vadd.f32 %v878_v60, %v72_v57  ;;  %v259_v62 = vpop.f32.mrb[1].mxu0 }
  0xdd   :  { %v260_v63 = vadd.f32 %v259_v62, %v67_v55  ;;  %v355_v62 = vld [vmem:[%s1398_s4 + $0x8] sm:$0xff] }
  0xde   :  { %v339_v0 = vmax.f32 %v265_v61, 0.0 }
  0xdf   :  { %v338_v2 = vmax.f32 %v260_v63, 0.0  ;;  %v881_v3 = vpop.f32.mrb[2].mxu0  ;;  %v356_v63 = vld [vmem:[%s1398_s4 + $0x10] sm:$0xff] }
  0xe0   :  { %v275_v5 = vadd.f32 %v881_v3, %v82_v56  ;;  %v269_v6 = vpop.f32.mrb[3].mxu0  ;;  %v360_v3 = vld [vmem:[%s1398_s4 + $0x30] sm:$0xff] }
  0xe1   :  { %v270_v7 = vadd.f32 %v269_v6, %v77_v54  ;;  %v995_v8 = vpack.c.bf16 %v339_v0, %v338_v2  ;;  %v137_v54 = vpop.permute.xlu0 %136  ;;  %v357_v0 = vld [vmem:[%s1398_s4 + $0x18] sm:$0xff]  ;;  %v359_v2 = vld [vmem:[%s1398_s4 + $0x28] sm:$0xff] }
  0xe2   :  { %v341_v9 = vmax.f32 %v275_v5, 0.0  ;;  %v362_v5 = vld [vmem:[%s1398_s4 + $0x40] sm:$0xff]  ;;  %v363_v6 = vld [vmem:[%s1398_s4 + $0x48] sm:$0xff] }
  0xe3   :  { %v340_v10 = vmax.f32 %v270_v7, 0.0  ;;  %v884_v11 = vpop.f32.mrb[4].mxu0  ;;  %996 = vmatprep.subr.bf16.mxu1 %v995_v8  ;;  %v364_v7 = vld [vmem:[%s1398_s4 + $0x50] sm:$0xff] }
  0xe4   :  { %v285_v12 = vadd.f32 %v884_v11, %v92_v58  ;;  %v279_v13 = vpop.f32.mrb[5].mxu0  ;;  %998 = vmatpush3.bf16.msra.mxu1 %v995_v8  ;;  %v365_v8 = vld [vmem:[%s1398_s4 + $0x58] sm:$0xff]  ;;  %v368_v11 = vld [vmem:[%s1398_s4 + $0x70] sm:$0xff] }
  0xe5   :  { %v999_v15 = vpack.c.bf16 %v341_v9, %v340_v10  ;;  %v280_v16 = vadd.f32 %v279_v13, %v87_v59  ;;  %v366_v9 = vld [vmem:[%s1398_s4 + $0x60] sm:$0xff]  ;;  %v367_v10 = vld [vmem:[%s1398_s4 + $0x68] sm:$0xff]  ;;  %v1091_v13 = vmov 0.0|0.0  }
  0xe6   :  { %v343_v18 = vmax.f32 %v285_v12, 0.0  ;;  %v369_v12 = vld [vmem:[%s1398_s4 + $0x78] sm:$0xff]  ;;  %1027 = vmatprep.subr.bf16.mxu0 %v1091_v13 }
  0xe7   :  { %v342_v19 = vmax.f32 %v280_v16, 0.0  ;;  %v887_v20 = vpop.f32.mrb[6].mxu0  ;;  %1000 = vmatprep.subr.bf16.mxu1 %v999_v15  ;;  %v389_v16 = vpop.permute.xlu0 %388 }
  0xe8   :  { %v295_v21 = vadd.f32 %v887_v20, %v102_v1  ;;  %v289_v22 = vpop.f32.mrb[7].mxu0  ;;  %1002 = vmatpush3.bf16.msra.mxu1 %v999_v15  ;;  %v358_v1 = vld [vmem:[%s1398_s4 + $0x20] sm:$0xff]  ;;  %v394_v15 = vpop.permute.xlu1 %393 }
  0xe9   :  { %v1003_v23 = vpack.c.bf16 %v343_v18, %v342_v19  ;;  %v290_v24 = vadd.f32 %v289_v22, %v97_v4  ;;  %v361_v4 = vld [vmem:[%s1398_s4 + $0x38] sm:$0xff] }
  0xea   :  { %v345_v25 = vmax.f32 %v295_v21, 0.0 }
  0xeb   :  { %v344_v27 = vmax.f32 %v290_v24, 0.0  ;;  %v890_v28 = vpop.f32.mrb[8].mxu0  ;;  %1004 = vmatprep.subr.bf16.mxu1 %v1003_v23  ;;  %v399_v18 = vpop.permute.xlu0 %398 }
  0xec   :  { %v305_v30 = vadd.f32 %v890_v28, %v112_v14  ;;  %v299_v31 = vpop.f32.mrb[9].mxu0  ;;  %1006 = vmatpush3.bf16.msra.mxu1 %v1003_v23  ;;  %v1093_v14 = vmov 0.0  }
  0xed   :  { %v1007_v32 = vpack.c.bf16 %v345_v25, %v344_v27  ;;  %v300_v33 = vadd.f32 %v299_v31, %v107_v17  ;;  %988 = vmatprep.mubr.msk.f32.mxu0 %vm1092_vm1, %v1093_v14  ;;  %v404_v17 = vpop.permute.xlu1 %403 }
  0xee   :  { %v347_v34 = vmax.f32 %v305_v30, 0.0 }
  0xef   :  { %v346_v35 = vmax.f32 %v300_v33, 0.0  ;;  %v893_v36 = vpop.f32.mrb[10].mxu0  ;;  %1008 = vmatprep.subr.bf16.mxu1 %v1007_v32  ;;  %v409_v20 = vpop.permute.xlu0 %408 }
  0xf0   :  { %v315_v37 = vadd.f32 %v893_v36, %v122_v26  ;;  %v309_v38 = vpop.f32.mrb[11].mxu0  ;;  %1010 = vmatpush3.bf16.msra.mxu1 %v1007_v32 }
  0xf1   :  { %v1011_v40 = vpack.c.bf16 %v347_v34, %v346_v35  ;;  %v310_v41 = vadd.f32 %v309_v38, %v117_v29  ;;  %v414_v19 = vpop.permute.xlu1 %413 }
  0xf2   :  { %v349_v43 = vmax.f32 %v315_v37, 0.0 }
  0xf3   :  { %v348_v44 = vmax.f32 %v310_v41, 0.0  ;;  %v896_v45 = vpop.f32.mrb[12].mxu0  ;;  %1012 = vmatprep.subr.bf16.mxu1 %v1011_v40  ;;  %v419_v29 = vpop.permute.xlu0 %418 }
  0xf4   :  { %v325_v46 = vadd.f32 %v896_v45, %v132_v39  ;;  %v319_v47 = vpop.f32.mrb[13].mxu0  ;;  %1014 = vmatpush3.bf16.msra.mxu1 %v1011_v40 }
  0xf5   :  { %v1015_v48 = vpack.c.bf16 %v349_v43, %v348_v44  ;;  %v320_v49 = vadd.f32 %v319_v47, %v127_v42  ;;  %v424_v26 = vpop.permute.xlu1 %423 }
  0xf6   :  { %v351_v50 = vmax.f32 %v325_v46, 0.0 }
  0xf7   :  { %v350_v52 = vmax.f32 %v320_v49, 0.0  ;;  %v899_v53 = vpop.f32.mrb[14].mxu0  ;;  %1016 = vmatprep.subr.bf16.mxu1 %v1015_v48  ;;  %v429_v42 = vpop.permute.xlu0 %428 }
  0xf8   :  { %v335_v55 = vadd.f32 %v899_v53, %v142_v51  ;;  %v329_v56 = vpop.f32.mrb[15].mxu0  ;;  %1018 = vmatpush3.bf16.msra.mxu1 %v1015_v48 }
  0xf9   :  { %v1019_v57 = vpack.c.bf16 %v351_v50, %v350_v52  ;;  %v330_v58 = vadd.f32 %v329_v56, %v137_v54  ;;  %v434_v39 = vpop.permute.xlu1 %433 }
  0xfa   :  { %v353_v59 = vmax.f32 %v335_v55, 0.0 }
  0xfb   :  { %v352_v60 = vmax.f32 %v330_v58, 0.0  ;;  %1020 = vmatprep.subr.bf16.mxu1 %v1019_v57  ;;  %v439_v54 = vpop.permute.xlu0 %438 }
  0xfc   :  { %1022 = vmatpush3.bf16.msra.mxu1 %v1019_v57 }
  0xfd   :  { %v1023_v61 = vpack.c.bf16 %v353_v59, %v352_v60  ;;  %v444_v51 = vpop.permute.xlu1 %443 }
  0xff   :  { %1024 = vmatprep.subr.bf16.mxu1 %v1023_v61 }
 0x100   :  { %1026 = vmatpush3.bf16.msra.mxu1 %v1023_v61 }
 0x103   :  { %933 = vmatmul.mubr.f32.vlgmr.msra.gmra.mrb[0].mxu1 %v355_v62 }
 0x104   :  { %935 = vmatprep.mubr.f32.mxu1 %v356_v63 }
 0x107   :  { %936 = vmatmul.mubr.f32.gmra.mrb[2].mxu1 %v357_v0  ;;  %v454_v0 = vpop.permute.xlu1 %453 }
 0x108   :  { %938 = vmatprep.mubr.f32.mxu1 %v358_v1 }
 0x10b   :  { %939 = vmatmul.mubr.f32.gmra.mrb[4].mxu1 %v359_v2 }
 0x10c   :  { %941 = vmatprep.mubr.f32.mxu1 %v360_v3  ;;  %v449_v3 = vpop.permute.xlu0 %448 }
 0x10f   :  { %942 = vmatmul.mubr.f32.gmra.mrb[6].mxu1 %v361_v4 }
 0x110   :  { %944 = vmatprep.mubr.f32.mxu1 %v362_v5 }
 0x113   :  { %945 = vmatmul.mubr.f32.gmra.mrb[8].mxu1 %v363_v6 }
 0x114   :  { %947 = vmatprep.mubr.f32.mxu1 %v364_v7 }
 0x117   :  { %948 = vmatmul.mubr.f32.gmra.mrb[10].mxu1 %v365_v8 }
 0x118   :  { %950 = vmatprep.mubr.f32.mxu1 %v366_v9 }
 0x11b   :  { %951 = vmatmul.mubr.f32.gmra.mrb[12].mxu1 %v367_v10 }
 0x11c   :  { %953 = vmatprep.mubr.f32.mxu1 %v368_v11 }
 0x11f   :  { %954 = vmatmul.mubr.f32.gmra.mrb[14].mxu1 %v369_v12  ;;  %v464_v12 = vpop.permute.xlu1 %463 }
 0x1d6   :  { %v934_v21 = vpop.f32.mrb[0].mxu1 }
 0x1d7   :  { %v538_v22 = vadd.f32 %v934_v21, %v394_v15  ;;  %v532_v23 = vpop.f32.mrb[1].mxu1 }
 0x1d8   :  { %v533_v24 = vadd.f32 %v532_v23, %v389_v16  ;;  %v459_v16 = vpop.permute.xlu0 %458 }
 0x1d9   :  { %v612_v25 = vmax.f32 %v538_v22, 0.0 }
 0x1da   :  { %v611_v27 = vmax.f32 %v533_v24, 0.0  ;;  %v937_v28 = vpop.f32.mrb[2].mxu1  ;;  %v627_v24 = vld [vmem:[%s1400_s6] sm:$0x7f] }
 0x1db   :  { %v548_v30 = vadd.f32 %v937_v28, %v404_v17  ;;  %v542_v31 = vpop.f32.mrb[3].mxu1 }
 0x1dc   :  { %v1028_v32 = vpack.c.bf16 %v612_v25, %v611_v27  ;;  %v543_v33 = vadd.f32 %v542_v31, %v399_v18  ;;  %v632_v25 = vpop.permute.xlu0 %631 }
 0x1dd   :  { %v614_v34 = vmax.f32 %v548_v30, 0.0 }
 0x1de   :  { %v613_v35 = vmax.f32 %v543_v33, 0.0  ;;  %v940_v36 = vpop.f32.mrb[4].mxu1  ;;  %1029 = vmatpush3.bf16.msra.mxu0 %v1028_v32 }
 0x1df   :  { %v558_v37 = vadd.f32 %v940_v36, %v414_v19  ;;  %v552_v38 = vpop.f32.mrb[5].mxu1  ;;  %1030 = vmatprep.subr.bf16.mxu0 %v1091_v13 }
 0x1e0   :  { %v1031_v40 = vpack.c.bf16 %v614_v34, %v613_v35  ;;  %v553_v41 = vadd.f32 %v552_v38, %v409_v20 }
 0x1e1   :  { %v616_v43 = vmax.f32 %v558_v37, 0.0 }
 0x1e2   :  { %v615_v44 = vmax.f32 %v553_v41, 0.0  ;;  %v943_v45 = vpop.f32.mrb[6].mxu1  ;;  %1032 = vmatpush3.bf16.msra.mxu0 %v1031_v40 }
 0x1e3   :  { %v568_v46 = vadd.f32 %v943_v45, %v424_v26  ;;  %v562_v47 = vpop.f32.mrb[7].mxu1  ;;  %1033 = vmatprep.subr.bf16.mxu0 %v1091_v13 }
 0x1e4   :  { %v1034_v48 = vpack.c.bf16 %v616_v43, %v615_v44  ;;  %v563_v49 = vadd.f32 %v562_v47, %v419_v29 }
 0x1e5   :  { %v618_v50 = vmax.f32 %v568_v46, 0.0 }
 0x1e6   :  { %v617_v52 = vmax.f32 %v563_v49, 0.0  ;;  %v946_v53 = vpop.f32.mrb[8].mxu1  ;;  %1035 = vmatpush3.bf16.msra.mxu0 %v1034_v48 }
 0x1e7   :  { %v578_v55 = vadd.f32 %v946_v53, %v434_v39  ;;  %v572_v56 = vpop.f32.mrb[9].mxu1  ;;  %1036 = vmatprep.subr.bf16.mxu0 %v1091_v13 }
 0x1e8   :  { %v1037_v57 = vpack.c.bf16 %v618_v50, %v617_v52  ;;  %v573_v58 = vadd.f32 %v572_v56, %v429_v42 }
 0x1e9   :  { %v620_v59 = vmax.f32 %v578_v55, 0.0 }
 0x1ea   :  { %v619_v60 = vmax.f32 %v573_v58, 0.0  ;;  %v949_v61 = vpop.f32.mrb[10].mxu1  ;;  %1038 = vmatpush3.bf16.msra.mxu0 %v1037_v57 }
 0x1eb   :  { %v588_v62 = vadd.f32 %v949_v61, %v444_v51  ;;  %v582_v63 = vpop.f32.mrb[11].mxu1  ;;  %1039 = vmatprep.subr.bf16.mxu0 %v1091_v13 }
 0x1ec   :  { %v1040_v1 = vpack.c.bf16 %v620_v59, %v619_v60  ;;  %v583_v2 = vadd.f32 %v582_v63, %v439_v54  ;;  %v740_v60 = vlaneseq }
 0x1ed   :  { %v622_v4 = vmax.f32 %v588_v62, 0.0  ;;  %v804_v62 = vld [vmem:[%s1395_s1] ss:$0 sm:$0xff]  ;;  %s1094_s1 = smov [#allocation2]  }
 0x1ee   :  { %v621_v5 = vmax.f32 %v583_v2, 0.0  ;;  %v952_v6 = vpop.f32.mrb[12].mxu1  ;;  %1041 = vmatpush3.bf16.msra.mxu0 %v1040_v1  ;;  %v741_v61 = vshrl.u32 %v740_v60, 7  ;;  %s780_s15 = sshll.u32 %s1094_s1, 4  ;;  %s781_s15 = int_to_ptr.vmem [resolvable:$true] %s780_s15 }
 0x1ef   :  { %v598_v7 = vadd.f32 %v952_v6, %v454_v0  ;;  %v592_v8 = vpop.f32.mrb[13].mxu1  ;;  %1042 = vmatprep.subr.bf16.mxu0 %v1091_v13  ;;  %s1066_s16 = scalar_lea.vmem %s781_s15, 64  ;;  %p1071_p1 = scmp.lt.s32.totalorder %s781_s15, %s781_s15 }
 0x1f0   :  { %v1043_v9 = vpack.c.bf16 %v622_v4, %v621_v5  ;;  %v593_v10 = vadd.f32 %v592_v8, %v449_v3  ;;  %vm746_vm3 = vcmp.eq.s32.totalorder %v741_v61, %v804_v62  ;;  %p1067_p0 = scmp.ne.s32.totalorder %s781_s15, %s1066_s16  ;;  %p1072_p2 = scmp.lt.s32.totalorder %s1066_s16, %s1066_s16 }
 0x1f1   :  { %v624_v11 = vmax.f32 %v598_v7, 0.0 }
 0x1f2   :  { %v623_v14 = vmax.f32 %v593_v10, 0.0  ;;  %v955_v15 = vpop.f32.mrb[14].mxu1  ;;  %1044 = vmatpush3.bf16.msra.mxu0 %v1043_v9  ;;  %p1073_p3 = por %p1072_p2, %p1071_p1 }
 0x1f3   :  { %v608_v17 = vadd.f32 %v955_v15, %v464_v12  ;;  %v602_v18 = vpop.f32.mrb[15].mxu1  ;;  %1045 = vmatprep.subr.bf16.mxu0 %v1091_v13 }
 0x1f4   :  { %v1046_v19 = vpack.c.bf16 %v624_v11, %v623_v14  ;;  %v603_v20 = vadd.f32 %v602_v18, %v459_v16  ;;  %p1074_p4 = pnand %p1073_p3, %p1067_p0 }
 0x1f5   :  { %v626_v21 = vmax.f32 %v608_v17, 0.0 }
 0x1f6   :  { %v625_v22 = vmax.f32 %v603_v20, 0.0  ;;  %1047 = vmatpush3.bf16.msra.mxu0 %v1046_v19 }
 0x1f7   :  { %1048 = vmatprep.subr.bf16.mxu0 %v1091_v13 }
 0x1f8   :  { %v1049_v23 = vpack.c.bf16 %v626_v21, %v625_v22 }
 0x1fa   :  { %1050 = vmatpush3.bf16.msra.mxu0 %v1049_v23 }
 0x1fd   :  { %989 = vmatmul.mubr.f32.vlgmr.msra.gmra.mrb[16].mxu0 %v627_v24 }
 0x2d0   :  { %v700_v26 = vpop.f32.mrb[16].mxu0 }
 0x2d1   :  { %v1368_v27 = vadd.f32 %v700_v26, %v632_v25  ;;  %v990_v28 = vpop.f32.mrb[17].mxu0 }
 0x2d3   :  { %v705_v29 = vsel %vm704_vm2, %v1368_v27, -inf  ;;  %v766_v16 = vrot.slane %v1368_v27, 5 }
 0x2d4   :  { %v706_v30 = vrot.slane %v705_v29, 4 }
 0x2d6   :  { %v707_v31 = vmax.f32 %v705_v29, %v706_v30 }
 0x2d8   :  { %v708_v32 = vrot.slane %v707_v31, 2 }
 0x2da   :  { %v709_v13 = vmax.f32 %v707_v31, %v708_v32 }
 0x2dc   :  { %v710_v33 = vrot.slane %v709_v13, 1 }
 0x2de   :  { %v711_v34 = vmax.f32 %v709_v13, %v710_v33 }
 0x2e0   :  { %v712_v35 = vsub.f32 %v1368_v27, %v711_v34 }
 0x2e2   :  { %v713_v36 = vmul.f32 1.442695, %v712_v35 }
 0x2e4   :  { %1058 = vpow2.f32 %v713_v36 }
 0x2ee   :  { %v1059_v37 = vpop.eup %1058 }
 0x2ef   :  { %v715_v38 = vsel %vm704_vm2, %v1059_v37, 0.0 }
 0x2f0   :  { %v716_v39 = vrot.slane %v715_v38, 4 }
 0x2f2   :  { %v717_v40 = vadd.f32 %v716_v39, %v715_v38 }
 0x2f4   :  { %v718_v41 = vrot.slane %v717_v40, 2 }
 0x2f6   :  { %v719_v42 = vadd.f32 %v718_v41, %v717_v40 }
 0x2f8   :  { %v720_v43 = vrot.slane %v719_v42, 1 }
 0x2fa   :  { %v721_v44 = vadd.f32 %v720_v43, %v719_v42 }
 0x2fc   :  { %1060 = vlog2.f32 %v721_v44 }
 0x306   :  { %v1061_v45 = vpop.eup %1060 }
 0x307   :  { %v723_v46 = vmul.f32 0.6931472, %v1061_v45 }
 0x309   :  { %v724_v47 = vadd.f32 %v723_v46, %v711_v34 }
 0x30b   :  { %v725_v48 = vsub.f32 %v1368_v27, %v724_v47 }
 0x30d   :  { %v726_v49 = vsel %vm704_vm2, %v725_v48, 0.0 }
 0x30e   :  { %v727_v50 = vrot.slane %v726_v49, 4 }
 0x310   :  { %v728_v51 = vadd.f32 %v727_v50, %v726_v49 }
 0x312   :  { %v729_v52 = vrot.slane %v728_v51, 2 }
 0x314   :  { %v730_v53 = vadd.f32 %v729_v52, %v728_v51 }
 0x316   :  { %v731_v54 = vrot.slane %v730_v53, 1 }
 0x318   :  { %v732_v55 = vadd.f32 %v731_v54, %v730_v53 }
 0x31a   :  { %1062 = vrcp.f32 %v732_v55 }
 0x324   :  { %v1063_v56 = vpop.eup %1062 }
 0x325   :  { %v734_v57 = vmul.f32 %v1063_v56, %v725_v48 }
 0x327   :  { %v735_v58 = vmax.f32 %v734_v57, 1.1920929e-07 }
 0x329   :  { %v736_v59 = vmin.f32 %v735_v58, 0.9999999 }
 0x32b   :  { %1064 = vlog2.f32 %v736_v59 }
 0x335   :  { %v1065_v63 = vpop.eup %1064 }
 0x336   :  { %v738_v0 = vmul.f32 0.6931472, %v1065_v63 }
 0x338   :  { %v755_v1 = vmax.f32 %v738_v0, -3.4028235e+38  ;;  %v747_v2 = vsel %vm746_vm3, %v738_v0, 0.0 }
 0x339   :  { %v748_v3 = vsel %vm704_vm2, %v747_v2, 0.0 }
 0x33a   :  { %v756_v4 = vmul.f32 %v755_v1, %v734_v57  ;;  %v749_v5 = vrot.slane %v748_v3, 4 }
 0x33c   :  { %v750_v6 = vadd.f32 %v749_v5, %v748_v3  ;;  %v757_v7 = vsel %vm704_vm2, %v756_v4, 0.0 }
 0x33d   :  { %v758_v8 = vrot.slane %v757_v7, 4 }
 0x33e   :  { %v751_v9 = vrot.slane %v750_v6, 2 }
 0x33f   :  { %v759_v10 = vadd.f32 %v758_v8, %v757_v7 }
 0x340   :  { %v752_v11 = vadd.f32 %v751_v9, %v750_v6 }
 0x341   :  { %v760_v12 = vrot.slane %v759_v10, 2 }
 0x342   :  { %v753_v14 = vrot.slane %v752_v11, 1 }
 0x343   :  { %v761_v15 = vadd.f32 %v760_v12, %v759_v10 }
 0x344   :  { %v754_v17 = vadd.f32 %v753_v14, %v752_v11 }
 0x345   :  { %v762_v18 = vrot.slane %v761_v15, 1 }
 0x346   :  { %v769_v19 = vsel %vm768_vm4, %v754_v17, %v766_v16 }
 0x347   :  { %v763_v20 = vadd.f32 %v762_v18, %v761_v15 }
 0x349   :  { %v764_v21 = vsub.f32 0.0, %v763_v20 }
 0x34b   :  { %v771_v22 = vsel %vm770_vm5, %v769_v19, %v764_v21 }
 0x34c   :  { %773 = vst.msk [vmem:[#allocation2] sm:$0x7] %vm772_vm6, %v771_v22 }
 0x34d   :  { %1077 = shalt.err (!%p1074_p4)
}
 0x34e   :  { %s1078_s19 = scalar_lea.hbm %s1402_s8, 64 }
 0x34f   :  { %p1079_p5 = scmp.ne.s32.totalorder %s1402_s8, %s1078_s19  ;;  %p1082_p6 = scmp.lt.u32.totalorder %s1078_s19, %s1402_s8 }
 0x351   :  { %p1084_p7 = pnand %p1082_p6, %p1079_p5 }
 0x353   :  { %1087 = shalt.err (!%p1084_p7)
}
 0x354   :  { %783 = dma.vmem_to_hbm [thread:$0]  %s781_s15, 64, %s1402_s8, [#allocation3]  }
 0x355   :  { %1088 = dma.done.wait [#allocation3], 64  }
 0x356   :  { %1089 = vsyncadd [#allocation3], 4294967232 }
 0x357   :  { %787 = vsyncpa [#allocation3], 1 }

</bundles_post_ra>
